<compile_context>
chip_gen: v7x
topology: tpu7x:2x2x1
jax: 0.10.0
libtpu: 0.0.40
codegen_flags: <defaults>
</compile_context>

<pallas_src>
import jax
import jax.numpy as jnp
from jax import lax
from jax.experimental import pallas as pl
from jax.experimental.pallas import tpu as pltpu


def _round_up(x, m):
    return ((x + m - 1) // m) * m


# -----------------------------------------------------------------------------
# Generation-aware VMEM budgets and tile selection.
# -----------------------------------------------------------------------------
def _physical_vmem_bytes():
    try:
        info = pltpu.get_tpu_info()
        cap = int(getattr(info, "vmem_capacity_bytes", 0) or 0)
        if cap > 0:
            return cap
    except Exception:
        pass
    return 64 << 20  # conservative (v7x-sized) default if the query fails


def _scoped_vmem_budget():
    phys = _physical_vmem_bytes()
    if phys >= (100 << 20):
        return 96 << 20   # v5e / v6e: 128 MiB physical -> use most of it
    return 44 << 20       # v7x: 64 MiB physical -> leave headroom for compiler scratch


def _step_vmem_bytes(tp, cin_p, cout_p, bb):
    x_blk = bb * 2 * cin_p * tp * 4
    w_blk = 3 * cin_p * cout_p * tp * 4
    o_blk = bb * 2 * cout_p * tp * 4
    return x_blk + w_blk + o_blk


def _choose_config(p, cin_p, cout_p, bb_max):
    """Pick (TP, P_pad, vmem_limit): TP first, then pad P to a multiple of TP.

    Crude cost model per candidate: padded VALU work + ~600-cycle per-grid-step
    overhead, subject to the double-buffered per-step VMEM budget.  TP is capped at
    512 so the three (8, TP) accumulators plus in-flight weight vregs stay well within
    the 64-vreg register file (measured lane-tile sweeps show 512 ~= 1024 anyway)."""
    budget = _scoped_vmem_budget()
    cands = []
    for tp in (512, 256, 128):
        p_pad = _round_up(p, tp)
        n_pt = p_pad // tp
        need = 2 * _step_vmem_bytes(tp, cin_p, cout_p, bb_max) + (2 << 20)
        if need > budget:
            continue
        compute = 6.0 * bb_max * cin_p * cout_p * p_pad / 4096.0   # ~VALU cycles
        overhead = 600.0 * n_pt                                     # per-step overhead
        cands.append((compute + overhead, -tp, tp, p_pad, n_pt, need))
    if not cands:
        # Degenerate fallback (huge Cin*Cout): smallest tile, capped limit.
        tp = 128
        p_pad = _round_up(p, tp)
        need = 2 * _step_vmem_bytes(tp, cin_p, cout_p, bb_max) + (2 << 20)
        return tp, p_pad, min(max(need, 32 << 20), budget)
    cands.sort()
    _, _, tp, p_pad, n_pt, need = cands[0]
    if n_pt == 1:
        # Prefer >= 2 P tiles when it adds no padded work: lets v7x's two TensorCores
        # split the P axis (each streams half the weights) instead of the batch axis.
        for c in cands:
            if c[4] >= 2 and c[3] == p_pad:
                _, _, tp, p_pad, n_pt, need = c
                break
    return tp, p_pad, min(max(need, 32 << 20), budget)


def _choose_batch_block(B):
    """Bb batches per grid step (weight-DMA hiding window); pad B if needed."""
    if B <= 4:
        return B, B
    for bb in (4, 3, 2):
        if B % bb == 0:
            return bb, B
    return 4, _round_up(B, 4)   # prime B > 4: accept a little batch padding


# -----------------------------------------------------------------------------
# Pallas kernel: per (P-tile, batch-block) step, complex channel mixing
#   out[b, o, p] = sum_i x[b, i, p] * w[i, o, p]
# using the Gauss planes (wr, wi-wr, wr+wi) with a 3-running-sum split.
# -----------------------------------------------------------------------------
_STATIC_CIN_UNROLL_MAX = 32   # fully unroll the Cin loop in Python up to this width
_CIN_LOOP_UNROLL = 8          # partial unroll for the fori_loop path (wide layers)
_OC_CHUNK = 8                 # Cout sub-block: 3 x (8, TP) f32 accumulators stay in vregs


def _spectral_mul_kernel(x_ref, w_ref, out_ref):
    # x_ref  : (Bb, 2, Cin, TP)       planes [xr, xi]
    # w_ref  : (3, Cin, Cout, TP)     planes [wr, wi - wr, wr + wi]
    # out_ref: (Bb, 2, Cout, TP)      planes [outr, outi]
    bb = x_ref.shape[0]
    cin = x_ref.shape[2]
    cout = w_ref.shape[2]
    tp = x_ref.shape[-1]

    for b in range(bb):                               # static, small (<= 4)
        for oc in range(0, cout, _OC_CHUNK):          # Cout chunking -> register-resident accs
            def body(i, carry, b=b, oc=oc):
                s, a, c = carry
                xr = x_ref[b, 0, pl.ds(i, 1), :]            # (1, TP), sublane-broadcast below
                xi = x_ref[b, 1, pl.ds(i, 1), :]
                wr = w_ref[0, i, pl.ds(oc, _OC_CHUNK), :]   # (OC, TP)  wr
                wm = w_ref[1, i, pl.ds(oc, _OC_CHUNK), :]   # (OC, TP)  wi - wr
                wp = w_ref[2, i, pl.ds(oc, _OC_CHUNK), :]   # (OC, TP)  wr + wi
                # Three running sums; finalize out_r = S - A, out_i = S + C once.
                s = s + wr * (xr + xi)
                a = a + wp * xi
                c = c + wm * xr
                return s, a, c

            zero = jnp.zeros((_OC_CHUNK, tp), jnp.float32)
            carry = (zero, zero, zero)
            if cin <= _STATIC_CIN_UNROLL_MAX:
                for i in range(cin):                  # static indices, no dynamic slicing
                    carry = body(i, carry)
            else:
                carry = lax.fori_loop(0, cin, body, carry,
                                      unroll=min(cin, _CIN_LOOP_UNROLL))
            s, a, c = carry
            out_ref[b, 0, pl.ds(oc, _OC_CHUNK), :] = s - a
            out_ref[b, 1, pl.ds(oc, _OC_CHUNK), :] = s + c


def spectral_mul(x_packed, w_packed, tp, bb, vmem_limit_bytes):
    """x_packed: (B_pad, 2, Cin_p, P_p) f32; w_packed: (3, Cin_p, Cout_p, P_p) f32.
    Returns (B_pad, 2, Cout_p, P_p) f32.  Requires P_p % tp == 0, tp % 128 == 0,
    Cin_p % 8 == 0, Cout_p % 8 == 0, B_pad % bb == 0."""
    b_pad, _, cin_p, p_pad = x_packed.shape
    cout_p = w_packed.shape[2]
    n_pt = p_pad // tp
    n_bt = b_pad // bb

    grid_spec = pltpu.PrefetchScalarGridSpec(
        num_scalar_prefetch=0,
        # P tiles outer / batch blocks inner: the weight block index is constant across
        # the inner batch loop so its DMA is skipped (weights streamed once per P tile).
        grid=(n_pt, n_bt),
        in_specs=[
            pl.BlockSpec((bb, 2, cin_p, tp), lambda p, b: (b, 0, 0, p)),        # x
            pl.BlockSpec((3, cin_p, cout_p, tp), lambda p, b: (0, 0, 0, p)),    # w
        ],
        out_specs=pl.BlockSpec((bb, 2, cout_p, tp), lambda p, b: (b, 0, 0, p)),
    )
    return pl.pallas_call(
        _spectral_mul_kernel,
        out_shape=jax.ShapeDtypeStruct((b_pad, 2, cout_p, p_pad), jnp.float32),
        grid_spec=grid_spec,
        compiler_params=pltpu.CompilerParams(
            dimension_semantics=("parallel", "parallel"),
            vmem_limit_bytes=vmem_limit_bytes,
        ),
    )(x_packed, w_packed)


# -----------------------------------------------------------------------------
# Module: SpectralConv2d_fast
# -----------------------------------------------------------------------------
class SpectralConv2dFast:
    def __init__(self, in_channels, out_channels, num_vars, modes1, modes2, key):
        self.in_channels = in_channels
        self.out_channels = out_channels
        self.num_vars = num_vars
        self.modes1 = modes1
        self.modes2 = modes2
        scale = 1.0 / (in_channels * out_channels)
        k1, k2, k3, k4 = jax.random.split(key, 4)
        shp = (in_channels, out_channels, num_vars, modes1, modes2)
        # torch.rand(..., dtype=cfloat): uniform [0,1) for real and imag parts.
        self.weights1 = scale * (jax.random.uniform(k1, shp, jnp.float32)
                                 + 1j * jax.random.uniform(k2, shp, jnp.float32)
                                 ).astype(jnp.complex64)
        self.weights2 = scale * (jax.random.uniform(k3, shp, jnp.float32)
                                 + 1j * jax.random.uniform(k4, shp, jnp.float32)
                                 ).astype(jnp.complex64)

        # ---- static kernel-layout parameters (weights are static -> precompute) ----
        Cin, Cout, V, m1, m2 = in_channels, out_channels, num_vars, modes1, modes2
        self._p = 2 * V * m1 * m2
        self._cin_pad = _round_up(Cin, 8)              # sublane alignment
        self._cout_pad = _round_up(Cout, 8)
        self._bb_max = 4                               # batch block upper bound
        self._tp, self._p_pad, self._vmem_limit = _choose_config(
            self._p, self._cin_pad, self._cout_pad, self._bb_max)

        # Packed weight planes [wr, wi-wr, wr+wi] for the Gauss 3-sum product.
        w_sel = jnp.stack([self.weights1, self.weights2], axis=2)     # (Cin,Cout,2,V,m1,m2)
        w_sel = w_sel.reshape(Cin, Cout, self._p)
        wr = jnp.real(w_sel).astype(jnp.float32)
        wi = jnp.imag(w_sel).astype(jnp.float32)
        w_packed = jnp.stack([wr, wi - wr, wr + wi], axis=0)          # (3,Cin,Cout,P)
        self._w_packed = jnp.pad(
            w_packed,
            ((0, 0),
             (0, self._cin_pad - Cin),
             (0, self._cout_pad - Cout),
             (0, self._p_pad - self._p)))

    def __call__(self, x):
        # x: (B, Cin, num_vars, H, W) float32
        B, Cin, V, H, W = x.shape
        m1, m2 = self.modes1, self.modes2
        Cout = self.out_channels
        P = self._p

        # TODO(synk): FFT has no clean Pallas equivalent on TPU; rfft2/irfft2 stay in jnp.
        x_ft = jnp.fft.rfft2(x, axes=(-2, -1))                  # (B, Cin, V, H, Wf) c64

        # Gather the two mode regions and flatten spectral positions.
        lo = x_ft[:, :, :, :m1, :m2]                             # (B, Cin, V, m1, m2)
        hi = x_ft[:, :, :, -m1:, :m2]                            # (B, Cin, V, m1, m2)
        x_sel = jnp.stack([lo, hi], axis=2).reshape(B, Cin, P)   # (B, Cin, P)

        xr = jnp.real(x_sel).astype(jnp.float32)
        xi = jnp.imag(x_sel).astype(jnp.float32)
        x_packed = jnp.stack([xr, xi], axis=1)                   # (B, 2, Cin, P)

        bb, b_pad = _choose_batch_block(B)
        x_packed = jnp.pad(
            x_packed,
            ((0, b_pad - B), (0, 0),
             (0, self._cin_pad - Cin),
             (0, self._p_pad - P)))                              # zero pad -> no-op in sums

        out_packed = spectral_mul(x_packed, self._w_packed, self._tp, bb,
                                  self._vmem_limit)
        out_r = out_packed[:B, 0, :Cout, :P]                     # (B, Cout, P)
        out_i = out_packed[:B, 1, :Cout, :P]
        out_c = (out_r + 1j * out_i).astype(jnp.complex64)
        out_c = out_c.reshape(B, Cout, 2, V, m1, m2)

        # Scatter back into the full spectral tensor (zeros elsewhere).
        Wf = W // 2 + 1
        out_ft = jnp.zeros((B, Cout, V, H, Wf), dtype=jnp.complex64)
        out_ft = out_ft.at[:, :, :, :m1, :m2].set(out_c[:, :, 0])
        out_ft = out_ft.at[:, :, :, H - m1:, :m2].set(out_c[:, :, 1])

        y = jnp.fft.irfft2(out_ft, s=(H, W), axes=(-2, -1))      # (B, Cout, V, H, W)
        return y.astype(jnp.float32)


# -----------------------------------------------------------------------------
# Pure-JAX reference for a correctness check (same math, no Pallas).
# -----------------------------------------------------------------------------
def reference_forward(mod, x):
    B, Cin, V, H, W = x.shape
    m1, m2 = mod.modes1, mod.modes2
    x_ft = jnp.fft.rfft2(x, axes=(-2, -1))
    out_ft = jnp.zeros((B, mod.out_channels, V, H, W // 2 + 1), dtype=jnp.complex64)
    out_ft = out_ft.at[:, :, :, :m1, :m2].set(
        jnp.einsum('bivxy,iovxy->bovxy', x_ft[:, :, :, :m1, :m2], mod.weights1))
    out_ft = out_ft.at[:, :, :, H - m1:, :m2].set(
        jnp.einsum('bivxy,iovxy->bovxy', x_ft[:, :, :, -m1:, :m2], mod.weights2))
    return jnp.fft.irfft2(out_ft, s=(H, W), axes=(-2, -1)).astype(jnp.float32)


if __name__ == "__main__":
    key = jax.random.PRNGKey(0)
    k_w, k_x = jax.random.split(key)

    # Small shapes consistent with the module: (B, in_channels, num_vars, H, W)
    B, Cin, Cout, V, H, W = 2, 4, 4, 3, 16, 16
    modes1, modes2 = 4, 4

    mod = SpectralConv2dFast(Cin, Cout, V, modes1, modes2, k_w)
    x = jax.random.normal(k_x, (B, Cin, V, H, W), dtype=jnp.float32)

    y = jax.block_until_ready(mod(x))
    y_ref = jax.block_until_ready(reference_forward(mod, x))

    assert y.shape == (B, Cout, V, H, W)
    err = float(jnp.max(jnp.abs(y - y_ref)))
    assert jnp.allclose(y, y_ref, atol=1e-5, rtol=1e-5), err

    print("KERNEL_OK")
</pallas_src>

<mosaic_0001>
module attributes {stable_mosaic.version = 11 : i64} {
  func.func @_spectral_mul_kernel(%arg0: i32, %arg1: i32, %arg2: memref<2x2x8x128xf32, #tpu.memory_space<vmem>>, %arg3: memref<3x8x8x128xf32, #tpu.memory_space<vmem>>, %arg4: memref<2x2x8x128xf32, #tpu.memory_space<vmem>>) attributes {dimension_semantics = [#tpu.dimension_semantics<parallel>, #tpu.dimension_semantics<parallel>], iteration_bounds = array<i64: 1, 1>, scalar_prefetch = 0 : i64, scratch_operands = 0 : i64, tpu.core_type = #tpu.core_type<tc>, window_params = [{transform_indices = @transform_0, window_bounds = array<i64: 2, 2, 8, 128>}, {transform_indices = @transform_1, window_bounds = array<i64: 3, 8, 8, 128>}, {transform_indices = @transform_2, window_bounds = array<i64: 2, 2, 8, 128>}]} {
    %cst = arith.constant 0.000000e+00 : f32
    %0 = vector.broadcast %cst : f32 to vector<8x128xf32>
    %c0 = arith.constant 0 : index
    %c0_0 = arith.constant 0 : index
    %c0_1 = arith.constant 0 : index
    %c0_2 = arith.constant 0 : index
    %1 = vector.load %arg2[%c0, %c0_0, %c0_1, %c0_2] : memref<2x2x8x128xf32, #tpu.memory_space<vmem>>, vector<1x1x1x128xf32>
    %2 = vector.shape_cast %1 : vector<1x1x1x128xf32> to vector<1x128xf32>
    %c0_3 = arith.constant 0 : index
    %c1 = arith.constant 1 : index
    %c0_4 = arith.constant 0 : index
    %c0_5 = arith.constant 0 : index
    %3 = vector.load %arg2[%c0_3, %c1, %c0_4, %c0_5] : memref<2x2x8x128xf32, #tpu.memory_space<vmem>>, vector<1x1x1x128xf32>
    %4 = vector.shape_cast %3 : vector<1x1x1x128xf32> to vector<1x128xf32>
    %c0_6 = arith.constant 0 : index
    %c0_7 = arith.constant 0 : index
    %c0_8 = arith.constant 0 : index
    %c0_9 = arith.constant 0 : index
    %5 = vector.load %arg3[%c0_6, %c0_7, %c0_8, %c0_9] : memref<3x8x8x128xf32, #tpu.memory_space<vmem>>, vector<1x1x8x128xf32>
    %6 = vector.shape_cast %5 : vector<1x1x8x128xf32> to vector<8x128xf32>
    %c1_10 = arith.constant 1 : index
    %c0_11 = arith.constant 0 : index
    %c0_12 = arith.constant 0 : index
    %c0_13 = arith.constant 0 : index
    %7 = vector.load %arg3[%c1_10, %c0_11, %c0_12, %c0_13] : memref<3x8x8x128xf32, #tpu.memory_space<vmem>>, vector<1x1x8x128xf32>
    %8 = vector.shape_cast %7 : vector<1x1x8x128xf32> to vector<8x128xf32>
    %c2 = arith.constant 2 : index
    %c0_14 = arith.constant 0 : index
    %c0_15 = arith.constant 0 : index
    %c0_16 = arith.constant 0 : index
    %9 = vector.load %arg3[%c2, %c0_14, %c0_15, %c0_16] : memref<3x8x8x128xf32, #tpu.memory_space<vmem>>, vector<1x1x8x128xf32>
    %10 = vector.shape_cast %9 : vector<1x1x8x128xf32> to vector<8x128xf32>
    %11 = arith.addf %2, %4 : vector<1x128xf32>
    %12 = vector.broadcast %11 : vector<1x128xf32> to vector<8x128xf32>
    %13 = arith.mulf %6, %12 : vector<8x128xf32>
    %14 = arith.addf %0, %13 : vector<8x128xf32>
    %15 = vector.broadcast %4 : vector<1x128xf32> to vector<8x128xf32>
    %16 = arith.mulf %10, %15 : vector<8x128xf32>
    %17 = arith.addf %0, %16 : vector<8x128xf32>
    %18 = vector.broadcast %2 : vector<1x128xf32> to vector<8x128xf32>
    %19 = arith.mulf %8, %18 : vector<8x128xf32>
    %20 = arith.addf %0, %19 : vector<8x128xf32>
    %c0_17 = arith.constant 0 : index
    %c0_18 = arith.constant 0 : index
    %c1_19 = arith.constant 1 : index
    %c0_20 = arith.constant 0 : index
    %21 = vector.load %arg2[%c0_17, %c0_18, %c1_19, %c0_20] : memref<2x2x8x128xf32, #tpu.memory_space<vmem>>, vector<1x1x1x128xf32>
    %22 = vector.shape_cast %21 : vector<1x1x1x128xf32> to vector<1x128xf32>
    %c0_21 = arith.constant 0 : index
    %c1_22 = arith.constant 1 : index
    %c1_23 = arith.constant 1 : index
    %c0_24 = arith.constant 0 : index
    %23 = vector.load %arg2[%c0_21, %c1_22, %c1_23, %c0_24] : memref<2x2x8x128xf32, #tpu.memory_space<vmem>>, vector<1x1x1x128xf32>
    %24 = vector.shape_cast %23 : vector<1x1x1x128xf32> to vector<1x128xf32>
    %c0_25 = arith.constant 0 : index
    %c1_26 = arith.constant 1 : index
    %c0_27 = arith.constant 0 : index
    %c0_28 = arith.constant 0 : index
    %25 = vector.load %arg3[%c0_25, %c1_26, %c0_27, %c0_28] : memref<3x8x8x128xf32, #tpu.memory_space<vmem>>, vector<1x1x8x128xf32>
    %26 = vector.shape_cast %25 : vector<1x1x8x128xf32> to vector<8x128xf32>
    %c1_29 = arith.constant 1 : index
    %c1_30 = arith.constant 1 : index
    %c0_31 = arith.constant 0 : index
    %c0_32 = arith.constant 0 : index
    %27 = vector.load %arg3[%c1_29, %c1_30, %c0_31, %c0_32] : memref<3x8x8x128xf32, #tpu.memory_space<vmem>>, vector<1x1x8x128xf32>
    %28 = vector.shape_cast %27 : vector<1x1x8x128xf32> to vector<8x128xf32>
    %c2_33 = arith.constant 2 : index
    %c1_34 = arith.constant 1 : index
    %c0_35 = arith.constant 0 : index
    %c0_36 = arith.constant 0 : index
    %29 = vector.load %arg3[%c2_33, %c1_34, %c0_35, %c0_36] : memref<3x8x8x128xf32, #tpu.memory_space<vmem>>, vector<1x1x8x128xf32>
    %30 = vector.shape_cast %29 : vector<1x1x8x128xf32> to vector<8x128xf32>
    %31 = arith.addf %22, %24 : vector<1x128xf32>
    %32 = vector.broadcast %31 : vector<1x128xf32> to vector<8x128xf32>
    %33 = arith.mulf %26, %32 : vector<8x128xf32>
    %34 = arith.addf %14, %33 : vector<8x128xf32>
    %35 = vector.broadcast %24 : vector<1x128xf32> to vector<8x128xf32>
    %36 = arith.mulf %30, %35 : vector<8x128xf32>
    %37 = arith.addf %17, %36 : vector<8x128xf32>
    %38 = vector.broadcast %22 : vector<1x128xf32> to vector<8x128xf32>
    %39 = arith.mulf %28, %38 : vector<8x128xf32>
    %40 = arith.addf %20, %39 : vector<8x128xf32>
    %c0_37 = arith.constant 0 : index
    %c0_38 = arith.constant 0 : index
    %c2_39 = arith.constant 2 : index
    %c0_40 = arith.constant 0 : index
    %41 = vector.load %arg2[%c0_37, %c0_38, %c2_39, %c0_40] : memref<2x2x8x128xf32, #tpu.memory_space<vmem>>, vector<1x1x1x128xf32>
    %42 = vector.shape_cast %41 : vector<1x1x1x128xf32> to vector<1x128xf32>
    %c0_41 = arith.constant 0 : index
    %c1_42 = arith.constant 1 : index
    %c2_43 = arith.constant 2 : index
    %c0_44 = arith.constant 0 : index
    %43 = vector.load %arg2[%c0_41, %c1_42, %c2_43, %c0_44] : memref<2x2x8x128xf32, #tpu.memory_space<vmem>>, vector<1x1x1x128xf32>
    %44 = vector.shape_cast %43 : vector<1x1x1x128xf32> to vector<1x128xf32>
    %c0_45 = arith.constant 0 : index
    %c2_46 = arith.constant 2 : index
    %c0_47 = arith.constant 0 : index
    %c0_48 = arith.constant 0 : index
    %45 = vector.load %arg3[%c0_45, %c2_46, %c0_47, %c0_48] : memref<3x8x8x128xf32, #tpu.memory_space<vmem>>, vector<1x1x8x128xf32>
    %46 = vector.shape_cast %45 : vector<1x1x8x128xf32> to vector<8x128xf32>
    %c1_49 = arith.constant 1 : index
    %c2_50 = arith.constant 2 : index
    %c0_51 = arith.constant 0 : index
    %c0_52 = arith.constant 0 : index
    %47 = vector.load %arg3[%c1_49, %c2_50, %c0_51, %c0_52] : memref<3x8x8x128xf32, #tpu.memory_space<vmem>>, vector<1x1x8x128xf32>
    %48 = vector.shape_cast %47 : vector<1x1x8x128xf32> to vector<8x128xf32>
    %c2_53 = arith.constant 2 : index
    %c2_54 = arith.constant 2 : index
    %c0_55 = arith.constant 0 : index
    %c0_56 = arith.constant 0 : index
    %49 = vector.load %arg3[%c2_53, %c2_54, %c0_55, %c0_56] : memref<3x8x8x128xf32, #tpu.memory_space<vmem>>, vector<1x1x8x128xf32>
    %50 = vector.shape_cast %49 : vector<1x1x8x128xf32> to vector<8x128xf32>
    %51 = arith.addf %42, %44 : vector<1x128xf32>
    %52 = vector.broadcast %51 : vector<1x128xf32> to vector<8x128xf32>
    %53 = arith.mulf %46, %52 : vector<8x128xf32>
    %54 = arith.addf %34, %53 : vector<8x128xf32>
    %55 = vector.broadcast %44 : vector<1x128xf32> to vector<8x128xf32>
    %56 = arith.mulf %50, %55 : vector<8x128xf32>
    %57 = arith.addf %37, %56 : vector<8x128xf32>
    %58 = vector.broadcast %42 : vector<1x128xf32> to vector<8x128xf32>
    %59 = arith.mulf %48, %58 : vector<8x128xf32>
    %60 = arith.addf %40, %59 : vector<8x128xf32>
    %c0_57 = arith.constant 0 : index
    %c0_58 = arith.constant 0 : index
    %c3 = arith.constant 3 : index
    %c0_59 = arith.constant 0 : index
    %61 = vector.load %arg2[%c0_57, %c0_58, %c3, %c0_59] : memref<2x2x8x128xf32, #tpu.memory_space<vmem>>, vector<1x1x1x128xf32>
    %62 = vector.shape_cast %61 : vector<1x1x1x128xf32> to vector<1x128xf32>
    %c0_60 = arith.constant 0 : index
    %c1_61 = arith.constant 1 : index
    %c3_62 = arith.constant 3 : index
    %c0_63 = arith.constant 0 : index
    %63 = vector.load %arg2[%c0_60, %c1_61, %c3_62, %c0_63] : memref<2x2x8x128xf32, #tpu.memory_space<vmem>>, vector<1x1x1x128xf32>
    %64 = vector.shape_cast %63 : vector<1x1x1x128xf32> to vector<1x128xf32>
    %c0_64 = arith.constant 0 : index
    %c3_65 = arith.constant 3 : index
    %c0_66 = arith.constant 0 : index
    %c0_67 = arith.constant 0 : index
    %65 = vector.load %arg3[%c0_64, %c3_65, %c0_66, %c0_67] : memref<3x8x8x128xf32, #tpu.memory_space<vmem>>, vector<1x1x8x128xf32>
    %66 = vector.shape_cast %65 : vector<1x1x8x128xf32> to vector<8x128xf32>
    %c1_68 = arith.constant 1 : index
    %c3_69 = arith.constant 3 : index
    %c0_70 = arith.constant 0 : index
    %c0_71 = arith.constant 0 : index
    %67 = vector.load %arg3[%c1_68, %c3_69, %c0_70, %c0_71] : memref<3x8x8x128xf32, #tpu.memory_space<vmem>>, vector<1x1x8x128xf32>
    %68 = vector.shape_cast %67 : vector<1x1x8x128xf32> to vector<8x128xf32>
    %c2_72 = arith.constant 2 : index
    %c3_73 = arith.constant 3 : index
    %c0_74 = arith.constant 0 : index
    %c0_75 = arith.constant 0 : index
    %69 = vector.load %arg3[%c2_72, %c3_73, %c0_74, %c0_75] : memref<3x8x8x128xf32, #tpu.memory_space<vmem>>, vector<1x1x8x128xf32>
    %70 = vector.shape_cast %69 : vector<1x1x8x128xf32> to vector<8x128xf32>
    %71 = arith.addf %62, %64 : vector<1x128xf32>
    %72 = vector.broadcast %71 : vector<1x128xf32> to vector<8x128xf32>
    %73 = arith.mulf %66, %72 : vector<8x128xf32>
    %74 = arith.addf %54, %73 : vector<8x128xf32>
    %75 = vector.broadcast %64 : vector<1x128xf32> to vector<8x128xf32>
    %76 = arith.mulf %70, %75 : vector<8x128xf32>
    %77 = arith.addf %57, %76 : vector<8x128xf32>
    %78 = vector.broadcast %62 : vector<1x128xf32> to vector<8x128xf32>
    %79 = arith.mulf %68, %78 : vector<8x128xf32>
    %80 = arith.addf %60, %79 : vector<8x128xf32>
    %c0_76 = arith.constant 0 : index
    %c0_77 = arith.constant 0 : index
    %c4 = arith.constant 4 : index
    %c0_78 = arith.constant 0 : index
    %81 = vector.load %arg2[%c0_76, %c0_77, %c4, %c0_78] : memref<2x2x8x128xf32, #tpu.memory_space<vmem>>, vector<1x1x1x128xf32>
    %82 = vector.shape_cast %81 : vector<1x1x1x128xf32> to vector<1x128xf32>
    %c0_79 = arith.constant 0 : index
    %c1_80 = arith.constant 1 : index
    %c4_81 = arith.constant 4 : index
    %c0_82 = arith.constant 0 : index
    %83 = vector.load %arg2[%c0_79, %c1_80, %c4_81, %c0_82] : memref<2x2x8x128xf32, #tpu.memory_space<vmem>>, vector<1x1x1x128xf32>
    %84 = vector.shape_cast %83 : vector<1x1x1x128xf32> to vector<1x128xf32>
    %c0_83 = arith.constant 0 : index
    %c4_84 = arith.constant 4 : index
    %c0_85 = arith.constant 0 : index
    %c0_86 = arith.constant 0 : index
    %85 = vector.load %arg3[%c0_83, %c4_84, %c0_85, %c0_86] : memref<3x8x8x128xf32, #tpu.memory_space<vmem>>, vector<1x1x8x128xf32>
    %86 = vector.shape_cast %85 : vector<1x1x8x128xf32> to vector<8x128xf32>
    %c1_87 = arith.constant 1 : index
    %c4_88 = arith.constant 4 : index
    %c0_89 = arith.constant 0 : index
    %c0_90 = arith.constant 0 : index
    %87 = vector.load %arg3[%c1_87, %c4_88, %c0_89, %c0_90] : memref<3x8x8x128xf32, #tpu.memory_space<vmem>>, vector<1x1x8x128xf32>
    %88 = vector.shape_cast %87 : vector<1x1x8x128xf32> to vector<8x128xf32>
    %c2_91 = arith.constant 2 : index
    %c4_92 = arith.constant 4 : index
    %c0_93 = arith.constant 0 : index
    %c0_94 = arith.constant 0 : index
    %89 = vector.load %arg3[%c2_91, %c4_92, %c0_93, %c0_94] : memref<3x8x8x128xf32, #tpu.memory_space<vmem>>, vector<1x1x8x128xf32>
    %90 = vector.shape_cast %89 : vector<1x1x8x128xf32> to vector<8x128xf32>
    %91 = arith.addf %82, %84 : vector<1x128xf32>
    %92 = vector.broadcast %91 : vector<1x128xf32> to vector<8x128xf32>
    %93 = arith.mulf %86, %92 : vector<8x128xf32>
    %94 = arith.addf %74, %93 : vector<8x128xf32>
    %95 = vector.broadcast %84 : vector<1x128xf32> to vector<8x128xf32>
    %96 = arith.mulf %90, %95 : vector<8x128xf32>
    %97 = arith.addf %77, %96 : vector<8x128xf32>
    %98 = vector.broadcast %82 : vector<1x128xf32> to vector<8x128xf32>
    %99 = arith.mulf %88, %98 : vector<8x128xf32>
    %100 = arith.addf %80, %99 : vector<8x128xf32>
    %c0_95 = arith.constant 0 : index
    %c0_96 = arith.constant 0 : index
    %c5 = arith.constant 5 : index
    %c0_97 = arith.constant 0 : index
    %101 = vector.load %arg2[%c0_95, %c0_96, %c5, %c0_97] : memref<2x2x8x128xf32, #tpu.memory_space<vmem>>, vector<1x1x1x128xf32>
    %102 = vector.shape_cast %101 : vector<1x1x1x128xf32> to vector<1x128xf32>
    %c0_98 = arith.constant 0 : index
    %c1_99 = arith.constant 1 : index
    %c5_100 = arith.constant 5 : index
    %c0_101 = arith.constant 0 : index
    %103 = vector.load %arg2[%c0_98, %c1_99, %c5_100, %c0_101] : memref<2x2x8x128xf32, #tpu.memory_space<vmem>>, vector<1x1x1x128xf32>
    %104 = vector.shape_cast %103 : vector<1x1x1x128xf32> to vector<1x128xf32>
    %c0_102 = arith.constant 0 : index
    %c5_103 = arith.constant 5 : index
    %c0_104 = arith.constant 0 : index
    %c0_105 = arith.constant 0 : index
    %105 = vector.load %arg3[%c0_102, %c5_103, %c0_104, %c0_105] : memref<3x8x8x128xf32, #tpu.memory_space<vmem>>, vector<1x1x8x128xf32>
    %106 = vector.shape_cast %105 : vector<1x1x8x128xf32> to vector<8x128xf32>
    %c1_106 = arith.constant 1 : index
    %c5_107 = arith.constant 5 : index
    %c0_108 = arith.constant 0 : index
    %c0_109 = arith.constant 0 : index
    %107 = vector.load %arg3[%c1_106, %c5_107, %c0_108, %c0_109] : memref<3x8x8x128xf32, #tpu.memory_space<vmem>>, vector<1x1x8x128xf32>
    %108 = vector.shape_cast %107 : vector<1x1x8x128xf32> to vector<8x128xf32>
    %c2_110 = arith.constant 2 : index
    %c5_111 = arith.constant 5 : index
    %c0_112 = arith.constant 0 : index
    %c0_113 = arith.constant 0 : index
    %109 = vector.load %arg3[%c2_110, %c5_111, %c0_112, %c0_113] : memref<3x8x8x128xf32, #tpu.memory_space<vmem>>, vector<1x1x8x128xf32>
    %110 = vector.shape_cast %109 : vector<1x1x8x128xf32> to vector<8x128xf32>
    %111 = arith.addf %102, %104 : vector<1x128xf32>
    %112 = vector.broadcast %111 : vector<1x128xf32> to vector<8x128xf32>
    %113 = arith.mulf %106, %112 : vector<8x128xf32>
    %114 = arith.addf %94, %113 : vector<8x128xf32>
    %115 = vector.broadcast %104 : vector<1x128xf32> to vector<8x128xf32>
    %116 = arith.mulf %110, %115 : vector<8x128xf32>
    %117 = arith.addf %97, %116 : vector<8x128xf32>
    %118 = vector.broadcast %102 : vector<1x128xf32> to vector<8x128xf32>
    %119 = arith.mulf %108, %118 : vector<8x128xf32>
    %120 = arith.addf %100, %119 : vector<8x128xf32>
    %c0_114 = arith.constant 0 : index
    %c0_115 = arith.constant 0 : index
    %c6 = arith.constant 6 : index
    %c0_116 = arith.constant 0 : index
    %121 = vector.load %arg2[%c0_114, %c0_115, %c6, %c0_116] : memref<2x2x8x128xf32, #tpu.memory_space<vmem>>, vector<1x1x1x128xf32>
    %122 = vector.shape_cast %121 : vector<1x1x1x128xf32> to vector<1x128xf32>
    %c0_117 = arith.constant 0 : index
    %c1_118 = arith.constant 1 : index
    %c6_119 = arith.constant 6 : index
    %c0_120 = arith.constant 0 : index
    %123 = vector.load %arg2[%c0_117, %c1_118, %c6_119, %c0_120] : memref<2x2x8x128xf32, #tpu.memory_space<vmem>>, vector<1x1x1x128xf32>
    %124 = vector.shape_cast %123 : vector<1x1x1x128xf32> to vector<1x128xf32>
    %c0_121 = arith.constant 0 : index
    %c6_122 = arith.constant 6 : index
    %c0_123 = arith.constant 0 : index
    %c0_124 = arith.constant 0 : index
    %125 = vector.load %arg3[%c0_121, %c6_122, %c0_123, %c0_124] : memref<3x8x8x128xf32, #tpu.memory_space<vmem>>, vector<1x1x8x128xf32>
    %126 = vector.shape_cast %125 : vector<1x1x8x128xf32> to vector<8x128xf32>
    %c1_125 = arith.constant 1 : index
    %c6_126 = arith.constant 6 : index
    %c0_127 = arith.constant 0 : index
    %c0_128 = arith.constant 0 : index
    %127 = vector.load %arg3[%c1_125, %c6_126, %c0_127, %c0_128] : memref<3x8x8x128xf32, #tpu.memory_space<vmem>>, vector<1x1x8x128xf32>
    %128 = vector.shape_cast %127 : vector<1x1x8x128xf32> to vector<8x128xf32>
    %c2_129 = arith.constant 2 : index
    %c6_130 = arith.constant 6 : index
    %c0_131 = arith.constant 0 : index
    %c0_132 = arith.constant 0 : index
    %129 = vector.load %arg3[%c2_129, %c6_130, %c0_131, %c0_132] : memref<3x8x8x128xf32, #tpu.memory_space<vmem>>, vector<1x1x8x128xf32>
    %130 = vector.shape_cast %129 : vector<1x1x8x128xf32> to vector<8x128xf32>
    %131 = arith.addf %122, %124 : vector<1x128xf32>
    %132 = vector.broadcast %131 : vector<1x128xf32> to vector<8x128xf32>
    %133 = arith.mulf %126, %132 : vector<8x128xf32>
    %134 = arith.addf %114, %133 : vector<8x128xf32>
    %135 = vector.broadcast %124 : vector<1x128xf32> to vector<8x128xf32>
    %136 = arith.mulf %130, %135 : vector<8x128xf32>
    %137 = arith.addf %117, %136 : vector<8x128xf32>
    %138 = vector.broadcast %122 : vector<1x128xf32> to vector<8x128xf32>
    %139 = arith.mulf %128, %138 : vector<8x128xf32>
    %140 = arith.addf %120, %139 : vector<8x128xf32>
    %c0_133 = arith.constant 0 : index
    %c0_134 = arith.constant 0 : index
    %c7 = arith.constant 7 : index
    %c0_135 = arith.constant 0 : index
    %141 = vector.load %arg2[%c0_133, %c0_134, %c7, %c0_135] : memref<2x2x8x128xf32, #tpu.memory_space<vmem>>, vector<1x1x1x128xf32>
    %142 = vector.shape_cast %141 : vector<1x1x1x128xf32> to vector<1x128xf32>
    %c0_136 = arith.constant 0 : index
    %c1_137 = arith.constant 1 : index
    %c7_138 = arith.constant 7 : index
    %c0_139 = arith.constant 0 : index
    %143 = vector.load %arg2[%c0_136, %c1_137, %c7_138, %c0_139] : memref<2x2x8x128xf32, #tpu.memory_space<vmem>>, vector<1x1x1x128xf32>
    %144 = vector.shape_cast %143 : vector<1x1x1x128xf32> to vector<1x128xf32>
    %c0_140 = arith.constant 0 : index
    %c7_141 = arith.constant 7 : index
    %c0_142 = arith.constant 0 : index
    %c0_143 = arith.constant 0 : index
    %145 = vector.load %arg3[%c0_140, %c7_141, %c0_142, %c0_143] : memref<3x8x8x128xf32, #tpu.memory_space<vmem>>, vector<1x1x8x128xf32>
    %146 = vector.shape_cast %145 : vector<1x1x8x128xf32> to vector<8x128xf32>
    %c1_144 = arith.constant 1 : index
    %c7_145 = arith.constant 7 : index
    %c0_146 = arith.constant 0 : index
    %c0_147 = arith.constant 0 : index
    %147 = vector.load %arg3[%c1_144, %c7_145, %c0_146, %c0_147] : memref<3x8x8x128xf32, #tpu.memory_space<vmem>>, vector<1x1x8x128xf32>
    %148 = vector.shape_cast %147 : vector<1x1x8x128xf32> to vector<8x128xf32>
    %c2_148 = arith.constant 2 : index
    %c7_149 = arith.constant 7 : index
    %c0_150 = arith.constant 0 : index
    %c0_151 = arith.constant 0 : index
    %149 = vector.load %arg3[%c2_148, %c7_149, %c0_150, %c0_151] : memref<3x8x8x128xf32, #tpu.memory_space<vmem>>, vector<1x1x8x128xf32>
    %150 = vector.shape_cast %149 : vector<1x1x8x128xf32> to vector<8x128xf32>
    %151 = arith.addf %142, %144 : vector<1x128xf32>
    %152 = vector.broadcast %151 : vector<1x128xf32> to vector<8x128xf32>
    %153 = arith.mulf %146, %152 : vector<8x128xf32>
    %154 = arith.addf %134, %153 : vector<8x128xf32>
    %155 = vector.broadcast %144 : vector<1x128xf32> to vector<8x128xf32>
    %156 = arith.mulf %150, %155 : vector<8x128xf32>
    %157 = arith.addf %137, %156 : vector<8x128xf32>
    %158 = vector.broadcast %142 : vector<1x128xf32> to vector<8x128xf32>
    %159 = arith.mulf %148, %158 : vector<8x128xf32>
    %160 = arith.addf %140, %159 : vector<8x128xf32>
    %161 = arith.subf %154, %157 : vector<8x128xf32>
    %c0_152 = arith.constant 0 : index
    %c0_153 = arith.constant 0 : index
    %c0_154 = arith.constant 0 : index
    %c0_155 = arith.constant 0 : index
    %162 = vector.load %arg4[%c0_152, %c0_153, %c0_154, %c0_155] : memref<2x2x8x128xf32, #tpu.memory_space<vmem>>, vector<1x1x8x128xf32>
    %163 = vector.shape_cast %162 : vector<1x1x8x128xf32> to vector<8x128xf32>
    %164 = vector.shape_cast %161 : vector<8x128xf32> to vector<1x1x8x128xf32>
    tpu.vector_store %arg4[%c0_152, %c0_153, %c0_154, %c0_155], %164 {strides = array<i32>} : memref<2x2x8x128xf32, #tpu.memory_space<vmem>>, vector<1x1x8x128xf32>,
    %165 = arith.addf %154, %160 : vector<8x128xf32>
    %c0_156 = arith.constant 0 : index
    %c1_157 = arith.constant 1 : index
    %c0_158 = arith.constant 0 : index
    %c0_159 = arith.constant 0 : index
    %166 = vector.load %arg4[%c0_156, %c1_157, %c0_158, %c0_159] : memref<2x2x8x128xf32, #tpu.memory_space<vmem>>, vector<1x1x8x128xf32>
    %167 = vector.shape_cast %166 : vector<1x1x8x128xf32> to vector<8x128xf32>
    %168 = vector.shape_cast %165 : vector<8x128xf32> to vector<1x1x8x128xf32>
    tpu.vector_store %arg4[%c0_156, %c1_157, %c0_158, %c0_159], %168 {strides = array<i32>} : memref<2x2x8x128xf32, #tpu.memory_space<vmem>>, vector<1x1x8x128xf32>,
    %cst_160 = arith.constant 0.000000e+00 : f32
    %169 = vector.broadcast %cst_160 : f32 to vector<8x128xf32>
    %c1_161 = arith.constant 1 : index
    %c0_162 = arith.constant 0 : index
    %c0_163 = arith.constant 0 : index
    %c0_164 = arith.constant 0 : index
    %170 = vector.load %arg2[%c1_161, %c0_162, %c0_163, %c0_164] : memref<2x2x8x128xf32, #tpu.memory_space<vmem>>, vector<1x1x1x128xf32>
    %171 = vector.shape_cast %170 : vector<1x1x1x128xf32> to vector<1x128xf32>
    %c1_165 = arith.constant 1 : index
    %c1_166 = arith.constant 1 : index
    %c0_167 = arith.constant 0 : index
    %c0_168 = arith.constant 0 : index
    %172 = vector.load %arg2[%c1_165, %c1_166, %c0_167, %c0_168] : memref<2x2x8x128xf32, #tpu.memory_space<vmem>>, vector<1x1x1x128xf32>
    %173 = vector.shape_cast %172 : vector<1x1x1x128xf32> to vector<1x128xf32>
    %c0_169 = arith.constant 0 : index
    %c0_170 = arith.constant 0 : index
    %c0_171 = arith.constant 0 : index
    %c0_172 = arith.constant 0 : index
    %174 = vector.load %arg3[%c0_169, %c0_170, %c0_171, %c0_172] : memref<3x8x8x128xf32, #tpu.memory_space<vmem>>, vector<1x1x8x128xf32>
    %175 = vector.shape_cast %174 : vector<1x1x8x128xf32> to vector<8x128xf32>
    %c1_173 = arith.constant 1 : index
    %c0_174 = arith.constant 0 : index
    %c0_175 = arith.constant 0 : index
    %c0_176 = arith.constant 0 : index
    %176 = vector.load %arg3[%c1_173, %c0_174, %c0_175, %c0_176] : memref<3x8x8x128xf32, #tpu.memory_space<vmem>>, vector<1x1x8x128xf32>
    %177 = vector.shape_cast %176 : vector<1x1x8x128xf32> to vector<8x128xf32>
    %c2_177 = arith.constant 2 : index
    %c0_178 = arith.constant 0 : index
    %c0_179 = arith.constant 0 : index
    %c0_180 = arith.constant 0 : index
    %178 = vector.load %arg3[%c2_177, %c0_178, %c0_179, %c0_180] : memref<3x8x8x128xf32, #tpu.memory_space<vmem>>, vector<1x1x8x128xf32>
    %179 = vector.shape_cast %178 : vector<1x1x8x128xf32> to vector<8x128xf32>
    %180 = arith.addf %171, %173 : vector<1x128xf32>
    %181 = vector.broadcast %180 : vector<1x128xf32> to vector<8x128xf32>
    %182 = arith.mulf %175, %181 : vector<8x128xf32>
    %183 = arith.addf %169, %182 : vector<8x128xf32>
    %184 = vector.broadcast %173 : vector<1x128xf32> to vector<8x128xf32>
    %185 = arith.mulf %179, %184 : vector<8x128xf32>
    %186 = arith.addf %169, %185 : vector<8x128xf32>
    %187 = vector.broadcast %171 : vector<1x128xf32> to vector<8x128xf32>
    %188 = arith.mulf %177, %187 : vector<8x128xf32>
    %189 = arith.addf %169, %188 : vector<8x128xf32>
    %c1_181 = arith.constant 1 : index
    %c0_182 = arith.constant 0 : index
    %c1_183 = arith.constant 1 : index
    %c0_184 = arith.constant 0 : index
    %190 = vector.load %arg2[%c1_181, %c0_182, %c1_183, %c0_184] : memref<2x2x8x128xf32, #tpu.memory_space<vmem>>, vector<1x1x1x128xf32>
    %191 = vector.shape_cast %190 : vector<1x1x1x128xf32> to vector<1x128xf32>
    %c1_185 = arith.constant 1 : index
    %c1_186 = arith.constant 1 : index
    %c1_187 = arith.constant 1 : index
    %c0_188 = arith.constant 0 : index
    %192 = vector.load %arg2[%c1_185, %c1_186, %c1_187, %c0_188] : memref<2x2x8x128xf32, #tpu.memory_space<vmem>>, vector<1x1x1x128xf32>
    %193 = vector.shape_cast %192 : vector<1x1x1x128xf32> to vector<1x128xf32>
    %c0_189 = arith.constant 0 : index
    %c1_190 = arith.constant 1 : index
    %c0_191 = arith.constant 0 : index
    %c0_192 = arith.constant 0 : index
    %194 = vector.load %arg3[%c0_189, %c1_190, %c0_191, %c0_192] : memref<3x8x8x128xf32, #tpu.memory_space<vmem>>, vector<1x1x8x128xf32>
    %195 = vector.shape_cast %194 : vector<1x1x8x128xf32> to vector<8x128xf32>
    %c1_193 = arith.constant 1 : index
    %c1_194 = arith.constant 1 : index
    %c0_195 = arith.constant 0 : index
    %c0_196 = arith.constant 0 : index
    %196 = vector.load %arg3[%c1_193, %c1_194, %c0_195, %c0_196] : memref<3x8x8x128xf32, #tpu.memory_space<vmem>>, vector<1x1x8x128xf32>
    %197 = vector.shape_cast %196 : vector<1x1x8x128xf32> to vector<8x128xf32>
    %c2_197 = arith.constant 2 : index
    %c1_198 = arith.constant 1 : index
    %c0_199 = arith.constant 0 : index
    %c0_200 = arith.constant 0 : index
    %198 = vector.load %arg3[%c2_197, %c1_198, %c0_199, %c0_200] : memref<3x8x8x128xf32, #tpu.memory_space<vmem>>, vector<1x1x8x128xf32>
    %199 = vector.shape_cast %198 : vector<1x1x8x128xf32> to vector<8x128xf32>
    %200 = arith.addf %191, %193 : vector<1x128xf32>
    %201 = vector.broadcast %200 : vector<1x128xf32> to vector<8x128xf32>
    %202 = arith.mulf %195, %201 : vector<8x128xf32>
    %203 = arith.addf %183, %202 : vector<8x128xf32>
    %204 = vector.broadcast %193 : vector<1x128xf32> to vector<8x128xf32>
    %205 = arith.mulf %199, %204 : vector<8x128xf32>
    %206 = arith.addf %186, %205 : vector<8x128xf32>
    %207 = vector.broadcast %191 : vector<1x128xf32> to vector<8x128xf32>
    %208 = arith.mulf %197, %207 : vector<8x128xf32>
    %209 = arith.addf %189, %208 : vector<8x128xf32>
    %c1_201 = arith.constant 1 : index
    %c0_202 = arith.constant 0 : index
    %c2_203 = arith.constant 2 : index
    %c0_204 = arith.constant 0 : index
    %210 = vector.load %arg2[%c1_201, %c0_202, %c2_203, %c0_204] : memref<2x2x8x128xf32, #tpu.memory_space<vmem>>, vector<1x1x1x128xf32>
    %211 = vector.shape_cast %210 : vector<1x1x1x128xf32> to vector<1x128xf32>
    %c1_205 = arith.constant 1 : index
    %c1_206 = arith.constant 1 : index
    %c2_207 = arith.constant 2 : index
    %c0_208 = arith.constant 0 : index
    %212 = vector.load %arg2[%c1_205, %c1_206, %c2_207, %c0_208] : memref<2x2x8x128xf32, #tpu.memory_space<vmem>>, vector<1x1x1x128xf32>
    %213 = vector.shape_cast %212 : vector<1x1x1x128xf32> to vector<1x128xf32>
    %c0_209 = arith.constant 0 : index
    %c2_210 = arith.constant 2 : index
    %c0_211 = arith.constant 0 : index
    %c0_212 = arith.constant 0 : index
    %214 = vector.load %arg3[%c0_209, %c2_210, %c0_211, %c0_212] : memref<3x8x8x128xf32, #tpu.memory_space<vmem>>, vector<1x1x8x128xf32>
    %215 = vector.shape_cast %214 : vector<1x1x8x128xf32> to vector<8x128xf32>
    %c1_213 = arith.constant 1 : index
    %c2_214 = arith.constant 2 : index
    %c0_215 = arith.constant 0 : index
    %c0_216 = arith.constant 0 : index
    %216 = vector.load %arg3[%c1_213, %c2_214, %c0_215, %c0_216] : memref<3x8x8x128xf32, #tpu.memory_space<vmem>>, vector<1x1x8x128xf32>
    %217 = vector.shape_cast %216 : vector<1x1x8x128xf32> to vector<8x128xf32>
    %c2_217 = arith.constant 2 : index
    %c2_218 = arith.constant 2 : index
    %c0_219 = arith.constant 0 : index
    %c0_220 = arith.constant 0 : index
    %218 = vector.load %arg3[%c2_217, %c2_218, %c0_219, %c0_220] : memref<3x8x8x128xf32, #tpu.memory_space<vmem>>, vector<1x1x8x128xf32>
    %219 = vector.shape_cast %218 : vector<1x1x8x128xf32> to vector<8x128xf32>
    %220 = arith.addf %211, %213 : vector<1x128xf32>
    %221 = vector.broadcast %220 : vector<1x128xf32> to vector<8x128xf32>
    %222 = arith.mulf %215, %221 : vector<8x128xf32>
    %223 = arith.addf %203, %222 : vector<8x128xf32>
    %224 = vector.broadcast %213 : vector<1x128xf32> to vector<8x128xf32>
    %225 = arith.mulf %219, %224 : vector<8x128xf32>
    %226 = arith.addf %206, %225 : vector<8x128xf32>
    %227 = vector.broadcast %211 : vector<1x128xf32> to vector<8x128xf32>
    %228 = arith.mulf %217, %227 : vector<8x128xf32>
    %229 = arith.addf %209, %228 : vector<8x128xf32>
    %c1_221 = arith.constant 1 : index
    %c0_222 = arith.constant 0 : index
    %c3_223 = arith.constant 3 : index
    %c0_224 = arith.constant 0 : index
    %230 = vector.load %arg2[%c1_221, %c0_222, %c3_223, %c0_224] : memref<2x2x8x128xf32, #tpu.memory_space<vmem>>, vector<1x1x1x128xf32>
    %231 = vector.shape_cast %230 : vector<1x1x1x128xf32> to vector<1x128xf32>
    %c1_225 = arith.constant 1 : index
    %c1_226 = arith.constant 1 : index
    %c3_227 = arith.constant 3 : index
    %c0_228 = arith.constant 0 : index
    %232 = vector.load %arg2[%c1_225, %c1_226, %c3_227, %c0_228] : memref<2x2x8x128xf32, #tpu.memory_space<vmem>>, vector<1x1x1x128xf32>
    %233 = vector.shape_cast %232 : vector<1x1x1x128xf32> to vector<1x128xf32>
    %c0_229 = arith.constant 0 : index
    %c3_230 = arith.constant 3 : index
    %c0_231 = arith.constant 0 : index
    %c0_232 = arith.constant 0 : index
    %234 = vector.load %arg3[%c0_229, %c3_230, %c0_231, %c0_232] : memref<3x8x8x128xf32, #tpu.memory_space<vmem>>, vector<1x1x8x128xf32>
    %235 = vector.shape_cast %234 : vector<1x1x8x128xf32> to vector<8x128xf32>
    %c1_233 = arith.constant 1 : index
    %c3_234 = arith.constant 3 : index
    %c0_235 = arith.constant 0 : index
    %c0_236 = arith.constant 0 : index
    %236 = vector.load %arg3[%c1_233, %c3_234, %c0_235, %c0_236] : memref<3x8x8x128xf32, #tpu.memory_space<vmem>>, vector<1x1x8x128xf32>
    %237 = vector.shape_cast %236 : vector<1x1x8x128xf32> to vector<8x128xf32>
    %c2_237 = arith.constant 2 : index
    %c3_238 = arith.constant 3 : index
    %c0_239 = arith.constant 0 : index
    %c0_240 = arith.constant 0 : index
    %238 = vector.load %arg3[%c2_237, %c3_238, %c0_239, %c0_240] : memref<3x8x8x128xf32, #tpu.memory_space<vmem>>, vector<1x1x8x128xf32>
    %239 = vector.shape_cast %238 : vector<1x1x8x128xf32> to vector<8x128xf32>
    %240 = arith.addf %231, %233 : vector<1x128xf32>
    %241 = vector.broadcast %240 : vector<1x128xf32> to vector<8x128xf32>
    %242 = arith.mulf %235, %241 : vector<8x128xf32>
    %243 = arith.addf %223, %242 : vector<8x128xf32>
    %244 = vector.broadcast %233 : vector<1x128xf32> to vector<8x128xf32>
    %245 = arith.mulf %239, %244 : vector<8x128xf32>
    %246 = arith.addf %226, %245 : vector<8x128xf32>
    %247 = vector.broadcast %231 : vector<1x128xf32> to vector<8x128xf32>
    %248 = arith.mulf %237, %247 : vector<8x128xf32>
    %249 = arith.addf %229, %248 : vector<8x128xf32>
    %c1_241 = arith.constant 1 : index
    %c0_242 = arith.constant 0 : index
    %c4_243 = arith.constant 4 : index
    %c0_244 = arith.constant 0 : index
    %250 = vector.load %arg2[%c1_241, %c0_242, %c4_243, %c0_244] : memref<2x2x8x128xf32, #tpu.memory_space<vmem>>, vector<1x1x1x128xf32>
    %251 = vector.shape_cast %250 : vector<1x1x1x128xf32> to vector<1x128xf32>
    %c1_245 = arith.constant 1 : index
    %c1_246 = arith.constant 1 : index
    %c4_247 = arith.constant 4 : index
    %c0_248 = arith.constant 0 : index
    %252 = vector.load %arg2[%c1_245, %c1_246, %c4_247, %c0_248] : memref<2x2x8x128xf32, #tpu.memory_space<vmem>>, vector<1x1x1x128xf32>
    %253 = vector.shape_cast %252 : vector<1x1x1x128xf32> to vector<1x128xf32>
    %c0_249 = arith.constant 0 : index
    %c4_250 = arith.constant 4 : index
    %c0_251 = arith.constant 0 : index
    %c0_252 = arith.constant 0 : index
    %254 = vector.load %arg3[%c0_249, %c4_250, %c0_251, %c0_252] : memref<3x8x8x128xf32, #tpu.memory_space<vmem>>, vector<1x1x8x128xf32>
    %255 = vector.shape_cast %254 : vector<1x1x8x128xf32> to vector<8x128xf32>
    %c1_253 = arith.constant 1 : index
    %c4_254 = arith.constant 4 : index
    %c0_255 = arith.constant 0 : index
    %c0_256 = arith.constant 0 : index
    %256 = vector.load %arg3[%c1_253, %c4_254, %c0_255, %c0_256] : memref<3x8x8x128xf32, #tpu.memory_space<vmem>>, vector<1x1x8x128xf32>
    %257 = vector.shape_cast %256 : vector<1x1x8x128xf32> to vector<8x128xf32>
    %c2_257 = arith.constant 2 : index
    %c4_258 = arith.constant 4 : index
    %c0_259 = arith.constant 0 : index
    %c0_260 = arith.constant 0 : index
    %258 = vector.load %arg3[%c2_257, %c4_258, %c0_259, %c0_260] : memref<3x8x8x128xf32, #tpu.memory_space<vmem>>, vector<1x1x8x128xf32>
    %259 = vector.shape_cast %258 : vector<1x1x8x128xf32> to vector<8x128xf32>
    %260 = arith.addf %251, %253 : vector<1x128xf32>
    %261 = vector.broadcast %260 : vector<1x128xf32> to vector<8x128xf32>
    %262 = arith.mulf %255, %261 : vector<8x128xf32>
    %263 = arith.addf %243, %262 : vector<8x128xf32>
    %264 = vector.broadcast %253 : vector<1x128xf32> to vector<8x128xf32>
    %265 = arith.mulf %259, %264 : vector<8x128xf32>
    %266 = arith.addf %246, %265 : vector<8x128xf32>
    %267 = vector.broadcast %251 : vector<1x128xf32> to vector<8x128xf32>
    %268 = arith.mulf %257, %267 : vector<8x128xf32>
    %269 = arith.addf %249, %268 : vector<8x128xf32>
    %c1_261 = arith.constant 1 : index
    %c0_262 = arith.constant 0 : index
    %c5_263 = arith.constant 5 : index
    %c0_264 = arith.constant 0 : index
    %270 = vector.load %arg2[%c1_261, %c0_262, %c5_263, %c0_264] : memref<2x2x8x128xf32, #tpu.memory_space<vmem>>, vector<1x1x1x128xf32>
    %271 = vector.shape_cast %270 : vector<1x1x1x128xf32> to vector<1x128xf32>
    %c1_265 = arith.constant 1 : index
    %c1_266 = arith.constant 1 : index
    %c5_267 = arith.constant 5 : index
    %c0_268 = arith.constant 0 : index
    %272 = vector.load %arg2[%c1_265, %c1_266, %c5_267, %c0_268] : memref<2x2x8x128xf32, #tpu.memory_space<vmem>>, vector<1x1x1x128xf32>
    %273 = vector.shape_cast %272 : vector<1x1x1x128xf32> to vector<1x128xf32>
    %c0_269 = arith.constant 0 : index
    %c5_270 = arith.constant 5 : index
    %c0_271 = arith.constant 0 : index
    %c0_272 = arith.constant 0 : index
    %274 = vector.load %arg3[%c0_269, %c5_270, %c0_271, %c0_272] : memref<3x8x8x128xf32, #tpu.memory_space<vmem>>, vector<1x1x8x128xf32>
    %275 = vector.shape_cast %274 : vector<1x1x8x128xf32> to vector<8x128xf32>
    %c1_273 = arith.constant 1 : index
    %c5_274 = arith.constant 5 : index
    %c0_275 = arith.constant 0 : index
    %c0_276 = arith.constant 0 : index
    %276 = vector.load %arg3[%c1_273, %c5_274, %c0_275, %c0_276] : memref<3x8x8x128xf32, #tpu.memory_space<vmem>>, vector<1x1x8x128xf32>
    %277 = vector.shape_cast %276 : vector<1x1x8x128xf32> to vector<8x128xf32>
    %c2_277 = arith.constant 2 : index
    %c5_278 = arith.constant 5 : index
    %c0_279 = arith.constant 0 : index
    %c0_280 = arith.constant 0 : index
    %278 = vector.load %arg3[%c2_277, %c5_278, %c0_279, %c0_280] : memref<3x8x8x128xf32, #tpu.memory_space<vmem>>, vector<1x1x8x128xf32>
    %279 = vector.shape_cast %278 : vector<1x1x8x128xf32> to vector<8x128xf32>
    %280 = arith.addf %271, %273 : vector<1x128xf32>
    %281 = vector.broadcast %280 : vector<1x128xf32> to vector<8x128xf32>
    %282 = arith.mulf %275, %281 : vector<8x128xf32>
    %283 = arith.addf %263, %282 : vector<8x128xf32>
    %284 = vector.broadcast %273 : vector<1x128xf32> to vector<8x128xf32>
    %285 = arith.mulf %279, %284 : vector<8x128xf32>
    %286 = arith.addf %266, %285 : vector<8x128xf32>
    %287 = vector.broadcast %271 : vector<1x128xf32> to vector<8x128xf32>
    %288 = arith.mulf %277, %287 : vector<8x128xf32>
    %289 = arith.addf %269, %288 : vector<8x128xf32>
    %c1_281 = arith.constant 1 : index
    %c0_282 = arith.constant 0 : index
    %c6_283 = arith.constant 6 : index
    %c0_284 = arith.constant 0 : index
    %290 = vector.load %arg2[%c1_281, %c0_282, %c6_283, %c0_284] : memref<2x2x8x128xf32, #tpu.memory_space<vmem>>, vector<1x1x1x128xf32>
    %291 = vector.shape_cast %290 : vector<1x1x1x128xf32> to vector<1x128xf32>
    %c1_285 = arith.constant 1 : index
    %c1_286 = arith.constant 1 : index
    %c6_287 = arith.constant 6 : index
    %c0_288 = arith.constant 0 : index
    %292 = vector.load %arg2[%c1_285, %c1_286, %c6_287, %c0_288] : memref<2x2x8x128xf32, #tpu.memory_space<vmem>>, vector<1x1x1x128xf32>
    %293 = vector.shape_cast %292 : vector<1x1x1x128xf32> to vector<1x128xf32>
    %c0_289 = arith.constant 0 : index
    %c6_290 = arith.constant 6 : index
    %c0_291 = arith.constant 0 : index
    %c0_292 = arith.constant 0 : index
    %294 = vector.load %arg3[%c0_289, %c6_290, %c0_291, %c0_292] : memref<3x8x8x128xf32, #tpu.memory_space<vmem>>, vector<1x1x8x128xf32>
    %295 = vector.shape_cast %294 : vector<1x1x8x128xf32> to vector<8x128xf32>
    %c1_293 = arith.constant 1 : index
    %c6_294 = arith.constant 6 : index
    %c0_295 = arith.constant 0 : index
    %c0_296 = arith.constant 0 : index
    %296 = vector.load %arg3[%c1_293, %c6_294, %c0_295, %c0_296] : memref<3x8x8x128xf32, #tpu.memory_space<vmem>>, vector<1x1x8x128xf32>
    %297 = vector.shape_cast %296 : vector<1x1x8x128xf32> to vector<8x128xf32>
    %c2_297 = arith.constant 2 : index
    %c6_298 = arith.constant 6 : index
    %c0_299 = arith.constant 0 : index
    %c0_300 = arith.constant 0 : index
    %298 = vector.load %arg3[%c2_297, %c6_298, %c0_299, %c0_300] : memref<3x8x8x128xf32, #tpu.memory_space<vmem>>, vector<1x1x8x128xf32>
    %299 = vector.shape_cast %298 : vector<1x1x8x128xf32> to vector<8x128xf32>
    %300 = arith.addf %291, %293 : vector<1x128xf32>
    %301 = vector.broadcast %300 : vector<1x128xf32> to vector<8x128xf32>
    %302 = arith.mulf %295, %301 : vector<8x128xf32>
    %303 = arith.addf %283, %302 : vector<8x128xf32>
    %304 = vector.broadcast %293 : vector<1x128xf32> to vector<8x128xf32>
    %305 = arith.mulf %299, %304 : vector<8x128xf32>
    %306 = arith.addf %286, %305 : vector<8x128xf32>
    %307 = vector.broadcast %291 : vector<1x128xf32> to vector<8x128xf32>
    %308 = arith.mulf %297, %307 : vector<8x128xf32>
    %309 = arith.addf %289, %308 : vector<8x128xf32>
    %c1_301 = arith.constant 1 : index
    %c0_302 = arith.constant 0 : index
    %c7_303 = arith.constant 7 : index
    %c0_304 = arith.constant 0 : index
    %310 = vector.load %arg2[%c1_301, %c0_302, %c7_303, %c0_304] : memref<2x2x8x128xf32, #tpu.memory_space<vmem>>, vector<1x1x1x128xf32>
    %311 = vector.shape_cast %310 : vector<1x1x1x128xf32> to vector<1x128xf32>
    %c1_305 = arith.constant 1 : index
    %c1_306 = arith.constant 1 : index
    %c7_307 = arith.constant 7 : index
    %c0_308 = arith.constant 0 : index
    %312 = vector.load %arg2[%c1_305, %c1_306, %c7_307, %c0_308] : memref<2x2x8x128xf32, #tpu.memory_space<vmem>>, vector<1x1x1x128xf32>
    %313 = vector.shape_cast %312 : vector<1x1x1x128xf32> to vector<1x128xf32>
    %c0_309 = arith.constant 0 : index
    %c7_310 = arith.constant 7 : index
    %c0_311 = arith.constant 0 : index
    %c0_312 = arith.constant 0 : index
    %314 = vector.load %arg3[%c0_309, %c7_310, %c0_311, %c0_312] : memref<3x8x8x128xf32, #tpu.memory_space<vmem>>, vector<1x1x8x128xf32>
    %315 = vector.shape_cast %314 : vector<1x1x8x128xf32> to vector<8x128xf32>
    %c1_313 = arith.constant 1 : index
    %c7_314 = arith.constant 7 : index
    %c0_315 = arith.constant 0 : index
    %c0_316 = arith.constant 0 : index
    %316 = vector.load %arg3[%c1_313, %c7_314, %c0_315, %c0_316] : memref<3x8x8x128xf32, #tpu.memory_space<vmem>>, vector<1x1x8x128xf32>
    %317 = vector.shape_cast %316 : vector<1x1x8x128xf32> to vector<8x128xf32>
    %c2_317 = arith.constant 2 : index
    %c7_318 = arith.constant 7 : index
    %c0_319 = arith.constant 0 : index
    %c0_320 = arith.constant 0 : index
    %318 = vector.load %arg3[%c2_317, %c7_318, %c0_319, %c0_320] : memref<3x8x8x128xf32, #tpu.memory_space<vmem>>, vector<1x1x8x128xf32>
    %319 = vector.shape_cast %318 : vector<1x1x8x128xf32> to vector<8x128xf32>
    %320 = arith.addf %311, %313 : vector<1x128xf32>
    %321 = vector.broadcast %320 : vector<1x128xf32> to vector<8x128xf32>
    %322 = arith.mulf %315, %321 : vector<8x128xf32>
    %323 = arith.addf %303, %322 : vector<8x128xf32>
    %324 = vector.broadcast %313 : vector<1x128xf32> to vector<8x128xf32>
    %325 = arith.mulf %319, %324 : vector<8x128xf32>
    %326 = arith.addf %306, %325 : vector<8x128xf32>
    %327 = vector.broadcast %311 : vector<1x128xf32> to vector<8x128xf32>
    %328 = arith.mulf %317, %327 : vector<8x128xf32>
    %329 = arith.addf %309, %328 : vector<8x128xf32>
    %330 = arith.subf %323, %326 : vector<8x128xf32>
    %c1_321 = arith.constant 1 : index
    %c0_322 = arith.constant 0 : index
    %c0_323 = arith.constant 0 : index
    %c0_324 = arith.constant 0 : index
    %331 = vector.load %arg4[%c1_321, %c0_322, %c0_323, %c0_324] : memref<2x2x8x128xf32, #tpu.memory_space<vmem>>, vector<1x1x8x128xf32>
    %332 = vector.shape_cast %331 : vector<1x1x8x128xf32> to vector<8x128xf32>
    %333 = vector.shape_cast %330 : vector<8x128xf32> to vector<1x1x8x128xf32>
    tpu.vector_store %arg4[%c1_321, %c0_322, %c0_323, %c0_324], %333 {strides = array<i32>} : memref<2x2x8x128xf32, #tpu.memory_space<vmem>>, vector<1x1x8x128xf32>,
    %334 = arith.addf %323, %329 : vector<8x128xf32>
    %c1_325 = arith.constant 1 : index
    %c1_326 = arith.constant 1 : index
    %c0_327 = arith.constant 0 : index
    %c0_328 = arith.constant 0 : index
    %335 = vector.load %arg4[%c1_325, %c1_326, %c0_327, %c0_328] : memref<2x2x8x128xf32, #tpu.memory_space<vmem>>, vector<1x1x8x128xf32>
    %336 = vector.shape_cast %335 : vector<1x1x8x128xf32> to vector<8x128xf32>
    %337 = vector.shape_cast %334 : vector<8x128xf32> to vector<1x1x8x128xf32>
    tpu.vector_store %arg4[%c1_325, %c1_326, %c0_327, %c0_328], %337 {strides = array<i32>} : memref<2x2x8x128xf32, #tpu.memory_space<vmem>>, vector<1x1x8x128xf32>,
    return
  }
  func.func @transform_0(%arg0: i32, %arg1: i32) -> (i32, i32, i32, i32) {
    %c0_i32 = arith.constant 0 : i32
    %c0_i32_0 = arith.constant 0 : i32
    %c0_i32_1 = arith.constant 0 : i32
    return %arg1, %c0_i32, %c0_i32_0, %arg0 : i32, i32, i32, i32
  }
  func.func @transform_1(%arg0: i32, %arg1: i32) -> (i32, i32, i32, i32) {
    %c0_i32 = arith.constant 0 : i32
    %c0_i32_0 = arith.constant 0 : i32
    %c0_i32_1 = arith.constant 0 : i32
    %c0_i32_2 = arith.constant 0 : i32
    return %c0_i32, %c0_i32_0, %c0_i32_1, %arg0 : i32, i32, i32, i32
  }
  func.func @transform_2(%arg0: i32, %arg1: i32) -> (i32, i32, i32, i32) {
    %c0_i32 = arith.constant 0 : i32
    %c0_i32_0 = arith.constant 0 : i32
    %c0_i32_1 = arith.constant 0 : i32
    return %arg1, %c0_i32, %c0_i32_0, %arg0 : i32, i32, i32, i32
  }
}

</mosaic_0001>

<bundles_post_ra>
// kernel: tpu_custom_call.1
= control target key start
LH: loop header
LB: loop body
LE: loop exit
PB: predicated region body
PF: predicated region fallthrough
CT: control target
= control target key end

     0   :  { %7 = vsyncpa [#allocation3], 0  ;;  %s828_s0 = inlined_call_operand.hbm [shape: f32[2,2,8,128], index: 0, kind: input, shape index: {}]   ;;  %s829_s1 = inlined_call_operand.hbm [shape: f32[3,8,8,128], index: 1, kind: input, shape index: {}]   ;;  %s830_s2 = inlined_call_operand.hbm [shape: f32[2,2,8,128], index: 2, kind: output, shape index: {}]  }
   0x1   :  { %8 = vsyncpa [#allocation6], 0 }
   0x2   :  { %9 = vsyncpa [#allocation4], 0  ;;  %s556_s9 = smov [#allocation2]   ;;  %s484_s13 = scalar_lea.hbm %s828_s0, 512 }
   0x3   :  { %s15_s10 = sshll.u32 %s556_s9, 4  ;;  %p485_p0 = scmp.ne.s32.totalorder %s828_s0, %s484_s13  ;;  %s16_s10 = int_to_ptr.vmem [resolvable:$true] %s15_s10 }
   0x4   :  { %p488_p1 = scmp.lt.u32.totalorder %s484_s13, %s828_s0 }
   0x6   :  { %p490_p2 = pnand %p488_p1, %p485_p0 }
   0x8   :  { %493 = shalt.err (!%p490_p2)
}
   0x9   :  { %s494_s18 = scalar_lea.vmem %s16_s10, 512  ;;  %p499_p4 = scmp.lt.s32.totalorder %s16_s10, %s16_s10 }
   0xa   :  { %p495_p3 = scmp.ne.s32.totalorder %s16_s10, %s494_s18  ;;  %p500_p5 = scmp.lt.s32.totalorder %s494_s18, %s494_s18 }
   0xc   :  { %p501_p6 = por %p500_p5, %p499_p4 }
   0xe   :  { %p502_p7 = pnand %p501_p6, %p495_p3 }
  0x10   :  { %505 = shalt.err (!%p502_p7)
}
  0x11   :  { %s557_s19 = smov 128   ;;  %s558_s20 = smov 8  }
  0x12   :  { %21 = dma.hbm_to_vmem [thread:$0]  %s828_s0, 512, %s16_s10, [#allocation3], %s557_s19, %s557_s19, %s558_s20  }
  0x13   :  { %s559_s23 = smov [#allocation5]   ;;  %s506_s27 = scalar_lea.hbm %s829_s1, 3072 }
  0x14   :  { %s27_s24 = sshll.u32 %s559_s23, 4  ;;  %p507_p8 = scmp.ne.s32.totalorder %s829_s1, %s506_s27  ;;  %s28_s24 = int_to_ptr.vmem [resolvable:$true] %s27_s24 }
  0x15   :  { %p510_p9 = scmp.lt.u32.totalorder %s506_s27, %s829_s1 }
  0x17   :  { %p512_p10 = pnand %p510_p9, %p507_p8 }
  0x19   :  { %515 = shalt.err (!%p512_p10)
}
  0x1a   :  { %s516_s4 = scalar_lea.vmem %s28_s24, 3072  ;;  %p521_p12 = scmp.lt.s32.totalorder %s28_s24, %s28_s24 }
  0x1b   :  { %p517_p11 = scmp.ne.s32.totalorder %s28_s24, %s516_s4  ;;  %p522_p13 = scmp.lt.s32.totalorder %s516_s4, %s516_s4 }
  0x1d   :  { %p523_p0 = por %p522_p13, %p521_p12 }
  0x1f   :  { %p524_p1 = pnand %p523_p0, %p517_p11 }
  0x21   :  { %527 = shalt.err (!%p524_p1)
}
  0x22   :  { %33 = dma.hbm_to_vmem [thread:$0]  %s829_s1, 3072, %s28_s24, [#allocation6], %s557_s19, %s557_s19, %s558_s20  }
  0x23   :  { %550 = dma.done.wait [#allocation3], 512  }
  0x24   :  { %551 = vsyncadd [#allocation3], 4294966784 }
  0x25   :  { %552 = dma.done.wait [#allocation6], 3072  }
  0x26   :  { %553 = vsyncadd [#allocation6], 4294964224  ;;  %v49_v0 = vlaneseq  ;;  %v608_v3 = vld [vmem:[#allocation2] sm:$0x1]  ;;  %v42_v4 = vld [vmem:[#allocation2 + $0x8] sm:$0x1] }
  0x27   :  { %v610_v5 = vld [vmem:[#allocation5 + $0x80] sm:$0xff]  ;;  %v48_v6 = vadd.f32 %v42_v4, %v608_v3  ;;  %v68_v9 = vld [vmem:[#allocation2 + $0x9] sm:$0x1]  ;;  %v95_v19 = vld [vmem:[#allocation2 + $0xa] sm:$0x1]  ;;  %s560_s1 = smov [#allocation7]  }
  0x28   :  { %v50_v1 = vshrl.u32 %v49_v0, 7  ;;  %v614_v8 = vld [vmem:[#allocation2 + $0x1] sm:$0x1]  ;;  %v618_v11 = vld [vmem:[#allocation5 + $0x88] sm:$0xff]  ;;  %v622_v14 = vld [vmem:[#allocation2 + $0x2] sm:$0x1] }
  0x29   :  { %v616_v10 = vld [vmem:[#allocation5] sm:$0xff]  ;;  %v75_v12 = vadd.f32 %v68_v9, %v614_v8  ;;  %v628_v18 = vld [vmem:[#allocation5 + $0x8] sm:$0xff]  ;;  %v630_v20 = vld [vmem:[#allocation5 + $0x90] sm:$0xff]  ;;  %v102_v26 = vadd.f32 %v95_v19, %v622_v14  ;;  %s466_s6 = sshll.u32 %s560_s1, 4  ;;  %s467_s6 = int_to_ptr.vmem [resolvable:$true] %s466_s6 }
  0x2a   :  { %v606_v2 = vsub.s32 0, %v50_v1  ;;  %v638_v25 = vld [vmem:[#allocation5 + $0x10] sm:$0xff]  ;;  %v642_v28 = vld [vmem:[#allocation2 + $0x3] sm:$0x1]  ;;  %v122_v29 = vld [vmem:[#allocation2 + $0xb] sm:$0x1]  ;;  %p533_p3 = scmp.lt.s32.totalorder %s467_s6, %s467_s6 }
  0x2b   :  { %v645_v31 = vld [vmem:[#allocation5 + $0x98] sm:$0xff]  ;;  %v129_v32 = vadd.f32 %v122_v29, %v642_v28  ;;  %v649_v34 = vld [vmem:[#allocation2 + $0x4] sm:$0x1]  ;;  %v149_v35 = vld [vmem:[#allocation2 + $0xc] sm:$0x1]  ;;  %s528_s7 = scalar_lea.vmem %s467_s6, 512 }
  0x2c   :  { %v58_v7 = vrot.slane %v42_v4, %v606_v2  ;;  %v85_v13 = vrot.slane %v68_v9, %v606_v2  ;;  %v64_v15 = vrot.slane %v608_v3, %v606_v2  ;;  %v52_v16 = vrot.slane %v48_v6, %v606_v2  ;;  %v656_v41 = vld [vmem:[#allocation5 + $0x18] sm:$0xff]  ;;  %v658_v42 = vld [vmem:[#allocation5 + $0xa0] sm:$0xff]  ;;  %v176_v49 = vld [vmem:[#allocation2 + $0xd] sm:$0x1]  ;;  %p529_p2 = scmp.ne.s32.totalorder %s467_s6, %s528_s7  ;;  %p534_p4 = scmp.lt.s32.totalorder %s528_s7, %s528_s7 }
  0x2d   :  { %v91_v21 = vrot.slane %v614_v8, %v606_v2  ;;  %v118_v22 = vrot.slane %v622_v14, %v606_v2  ;;  %v79_v23 = vrot.slane %v75_v12, %v606_v2  ;;  %v112_v27 = vrot.slane %v95_v19, %v606_v2  ;;  %v660_v43 = vld [vmem:[#allocation2 + $0x5] sm:$0x1]  ;;  %v669_v53 = vld [vmem:[#allocation5 + $0xa8] sm:$0xff]  ;;  %v672_v55 = vld [vmem:[#allocation2 + $0x6] sm:$0x1] }
  0x2e   :  { %v59_v17 = vmul.f32 %v58_v7, %v610_v5  ;;  %v86_v24 = vmul.f32 %v85_v13, %v618_v11  ;;  %v53_v30 = vmul.f32 %v52_v16, %v616_v10  ;;  %v139_v33 = vrot.slane %v122_v29, %v606_v2  ;;  %v664_v46 = vld [vmem:[#allocation5 + $0x20] sm:$0xff]  ;;  %v203_v56 = vld [vmem:[#allocation2 + $0xe] sm:$0x1]  ;;  %v230_v63 = vld [vmem:[#allocation2 + $0xf] sm:$0x1]  ;;  %p535_p5 = por %p534_p4, %p533_p3 }
  0x2f   :  { %v145_v36 = vrot.slane %v642_v28, %v606_v2  ;;  %v80_v37 = vmul.f32 %v79_v23, %v628_v18  ;;  %v106_v39 = vrot.slane %v102_v26, %v606_v2  ;;  %v113_v40 = vmul.f32 %v112_v27, %v630_v20  ;;  %v677_v60 = vld [vmem:[#allocation5 + $0x28] sm:$0xff]  ;;  %v229_v62 = vld [vmem:[#allocation2 + $0x7] sm:$0x1]  ;;  %v681_v6 = vld [vmem:[#allocation5 + $0xb0] sm:$0xff] }
  0x30   :  { %v87_v38 = vadd.f32 %v86_v24, %v59_v17  ;;  %v133_v44 = vrot.slane %v129_v32, %v606_v2  ;;  %v140_v45 = vmul.f32 %v139_v33, %v645_v31  ;;  %v156_v47 = vadd.f32 %v149_v35, %v649_v34  ;;  %v684_v9 = vld [vmem:[#allocation5 + $0x40] sm:$0xff]  ;;  %v688_v16 = vld [vmem:[#allocation5 + $0x30] sm:$0xff]  ;;  %v691_v19 = vld [vmem:[#allocation5 + $0x38] sm:$0xff]  ;;  %p536_p6 = pnand %p535_p5, %p529_p2 }
  0x31   :  { %v166_v48 = vrot.slane %v149_v35, %v606_v2  ;;  %v81_v50 = vadd.f32 %v80_v37, %v53_v30  ;;  %v107_v51 = vmul.f32 %v106_v39, %v638_v25  ;;  %v183_v54 = vadd.f32 %v176_v49, %v660_v43  ;;  %v693_v24 = vld [vmem:[#allocation5 + $0x48] sm:$0xff]  ;;  %v697_v30 = vld [vmem:[#allocation5 + $0xb8] sm:$0xff]  ;;  %v699_v32 = vld [vmem:[#allocation5 + $0x50] sm:$0xff] }
  0x32   :  { %v114_v52 = vadd.f32 %v113_v40, %v87_v38  ;;  %v134_v57 = vmul.f32 %v133_v44, %v656_v41  ;;  %v160_v58 = vrot.slane %v156_v47, %v606_v2  ;;  %v193_v61 = vrot.slane %v176_v49, %v606_v2  ;;  %v701_v33 = vld [vmem:[#allocation5 + $0x58] sm:$0xff] }
  0x33   :  { %v167_v59 = vmul.f32 %v166_v48, %v658_v42  ;;  %v108_v0 = vadd.f32 %v107_v51, %v81_v50  ;;  %v187_v4 = vrot.slane %v183_v54, %v606_v2  ;;  %v210_v7 = vadd.f32 %v203_v56, %v672_v55  ;;  %v715_v48 = vld [vmem:[#allocation2 + $0x10] sm:$0x1]  ;;  %v264_v49 = vld [vmem:[#allocation2 + $0x18] sm:$0x1] }
  0x34   :  { %v141_v1 = vadd.f32 %v140_v45, %v114_v52  ;;  %v161_v12 = vmul.f32 %v160_v58, %v664_v46  ;;  %v194_v13 = vmul.f32 %v193_v61, %v669_v53  ;;  %v220_v17 = vrot.slane %v203_v56, %v606_v2  ;;  %v724_v52 = vld [vmem:[#allocation5 + $0x60] sm:$0xff]  ;;  %v730_v58 = vld [vmem:[#allocation5 + $0x70] sm:$0xff] }
  0x35   :  { %v237_v23 = vadd.f32 %v230_v63, %v229_v62  ;;  %v135_v26 = vadd.f32 %v134_v57, %v108_v0  ;;  %v188_v28 = vmul.f32 %v187_v4, %v677_v60  ;;  %v214_v29 = vrot.slane %v210_v7, %v606_v2  ;;  %v728_v57 = vld [vmem:[#allocation5 + $0x68] sm:$0xff]  ;;  %v288_v0 = vld [vmem:[#allocation2 + $0x19] sm:$0x1] }
  0x36   :  { %v168_v27 = vadd.f32 %v167_v59, %v141_v1  ;;  %v221_v35 = vmul.f32 %v220_v17, %v681_v6  ;;  %v247_v38 = vrot.slane %v230_v63, %v606_v2  ;;  %v65_v39 = vmul.f32 %v64_v15, %v684_v9  ;;  %v732_v59 = vld [vmem:[#allocation5 + $0x78] sm:$0xff]  ;;  %v740_v63 = vld [vmem:[#allocation2 + $0x11] sm:$0x1] }
  0x37   :  { %v241_v37 = vrot.slane %v237_v23, %v606_v2  ;;  %v162_v40 = vadd.f32 %v161_v12, %v135_v26  ;;  %v215_v45 = vmul.f32 %v214_v29, %v688_v16  ;;  %v92_v47 = vmul.f32 %v91_v21, %v693_v24  ;;  %v743_v12 = vld [vmem:[#allocation2 + $0x12] sm:$0x1]  ;;  %v751_v29 = vld [vmem:[#allocation2 + $0x13] sm:$0x1] }
  0x38   :  { %v195_v44 = vadd.f32 %v194_v13, %v168_v27  ;;  %v248_v51 = vmul.f32 %v247_v38, %v697_v30  ;;  %v119_v3 = vmul.f32 %v118_v22, %v699_v32  ;;  %v146_v15 = vmul.f32 %v145_v36, %v701_v33  ;;  %v312_v13 = vld [vmem:[#allocation2 + $0x1a] sm:$0x1] }
  0x39   :  { %v242_v50 = vmul.f32 %v241_v37, %v691_v19  ;;  %v189_v54 = vadd.f32 %v188_v28, %v162_v40  ;;  %v93_v8 = vadd.f32 %v92_v47, %v65_v39  ;;  %v172_v21 = vrot.slane %v649_v34, %v606_v2 }
  0x3a   :  { %v222_v56 = vadd.f32 %v221_v35, %v195_v44  ;;  %v199_v14 = vrot.slane %v660_v43, %v606_v2  ;;  %v226_v22 = vrot.slane %v672_v55, %v606_v2  ;;  %v253_v36 = vrot.slane %v229_v62, %v606_v2  ;;  %v336_v35 = vld [vmem:[#allocation2 + $0x1b] sm:$0x1]  ;;  %v757_v44 = vld [vmem:[#allocation2 + $0x14] sm:$0x1] }
  0x3b   :  { %v268_v61 = vadd.f32 %v264_v49, %v715_v48  ;;  %v216_v34 = vadd.f32 %v215_v45, %v189_v54  ;;  %v120_v4 = vadd.f32 %v119_v3, %v93_v8  ;;  %v173_v7 = vmul.f32 %v172_v21, %v724_v52  ;;  %v360_v45 = vld [vmem:[#allocation2 + $0x1c] sm:$0x1] }
  0x3c   :  { %v249_v1 = vadd.f32 %v248_v51, %v222_v56  ;;  %v200_v43 = vmul.f32 %v199_v14, %v728_v57  ;;  %v227_v17 = vmul.f32 %v226_v22, %v730_v58  ;;  %v254_v55 = vmul.f32 %v253_v36, %v732_v59  ;;  %v768_v22 = vld [vmem:[#allocation2 + $0x15] sm:$0x1] }
  0x3d   :  { %v272_v62 = vrot.slane %v268_v61, %v606_v2  ;;  %v243_v23 = vadd.f32 %v242_v50, %v216_v34  ;;  %v147_v26 = vadd.f32 %v146_v15, %v120_v4  ;;  %v278_v27 = vrot.slane %v264_v49, %v606_v2  ;;  %v407_v4 = vld [vmem:[#allocation2 + $0x16] sm:$0x1] }
  0x3e   :  { %v292_v28 = vadd.f32 %v288_v0, %v740_v63  ;;  %v302_v38 = vrot.slane %v288_v0, %v606_v2  ;;  %v316_v39 = vadd.f32 %v312_v13, %v743_v12  ;;  %v326_v40 = vrot.slane %v312_v13, %v606_v2 }
  0x3f   :  { %v273_v37 = vmul.f32 %v272_v62, %v616_v10  ;;  %v256_v47 = vsub.f32 %v243_v23, %v249_v1  ;;  %v174_v50 = vadd.f32 %v173_v7, %v147_v26  ;;  %v279_v49 = vmul.f32 %v278_v27, %v610_v5  ;;  %v384_v5 = vld [vmem:[#allocation2 + $0x1d] sm:$0x1]  ;;  %v408_v7 = vld [vmem:[#allocation2 + $0x1e] sm:$0x1]  ;;  %v432_v27 = vld [vmem:[#allocation2 + $0x1f] sm:$0x1] }
  0x40   :  { %v296_v51 = vrot.slane %v292_v28, %v606_v2  ;;  %v303_v3 = vmul.f32 %v302_v38, %v618_v11  ;;  %v320_v15 = vrot.slane %v316_v39, %v606_v2  ;;  %v327_v10 = vmul.f32 %v326_v40, %v630_v20 }
  0x41   :  { %v340_v54 = vadd.f32 %v336_v35, %v751_v29  ;;  %257 = vst [vmem:[#allocation7] sm:$0xff] %v256_v47  ;;  %v201_v56 = vadd.f32 %v200_v43, %v174_v50  ;;  %v350_v21 = vrot.slane %v336_v35, %v606_v2  ;;  %v364_v14 = vadd.f32 %v360_v45, %v757_v44 }
  0x42   :  { %v297_v8 = vmul.f32 %v296_v51, %v628_v18  ;;  %v304_v36 = vadd.f32 %v303_v3, %v279_v49  ;;  %v321_v11 = vmul.f32 %v320_v15, %v638_v25  ;;  %v374_v20 = vrot.slane %v360_v45, %v606_v2  ;;  %v431_v25 = vld [vmem:[#allocation2 + $0x17] sm:$0x1] }
  0x43   :  { %v344_v61 = vrot.slane %v340_v54, %v606_v2  ;;  %v228_v0 = vadd.f32 %v227_v17, %v201_v56  ;;  %v351_v1 = vmul.f32 %v350_v21, %v645_v31  ;;  %v368_v18 = vrot.slane %v364_v14, %v606_v2 }
  0x44   :  { %v298_v34 = vadd.f32 %v297_v8, %v273_v37  ;;  %v328_v13 = vadd.f32 %v327_v10, %v304_v36  ;;  %v375_v62 = vmul.f32 %v374_v20, %v658_v42  ;;  %v388_v26 = vadd.f32 %v384_v5, %v768_v22 }
  0x45   :  { %v345_v43 = vmul.f32 %v344_v61, %v656_v41  ;;  %v255_v28 = vadd.f32 %v254_v55, %v228_v0  ;;  %v369_v17 = vmul.f32 %v368_v18, %v664_v46  ;;  %v398_v37 = vrot.slane %v384_v5, %v606_v2 }
  0x46   :  { %v322_v35 = vadd.f32 %v321_v11, %v298_v34  ;;  %v352_v31 = vadd.f32 %v351_v1, %v328_v13  ;;  %v392_v38 = vrot.slane %v388_v26, %v606_v2  ;;  %v412_v39 = vadd.f32 %v408_v7, %v407_v4 }
  0x47   :  { %v422_v40 = vrot.slane %v408_v7, %v606_v2  ;;  %v258_v45 = vadd.f32 %v255_v28, %v243_v23  ;;  %v399_v42 = vmul.f32 %v398_v37, %v669_v53  ;;  %v436_v47 = vadd.f32 %v432_v27, %v431_v25 }
  0x48   :  { %v346_v41 = vadd.f32 %v345_v43, %v322_v35  ;;  %v376_v50 = vadd.f32 %v375_v62, %v352_v31  ;;  %v393_v49 = vmul.f32 %v392_v38, %v677_v60  ;;  %v416_v55 = vrot.slane %v412_v39, %v606_v2 }
  0x49   :  { %v423_v46 = vmul.f32 %v422_v40, %v681_v6  ;;  %260 = vst [vmem:[#allocation7 + $0x8] sm:$0xff] %v258_v45  ;;  %v440_v3 = vrot.slane %v436_v47, %v606_v2  ;;  %v446_v15 = vrot.slane %v432_v27, %v606_v2  ;;  %v284_v23 = vrot.slane %v715_v48, %v606_v2 }
  0x4a   :  { %v370_v51 = vadd.f32 %v369_v17, %v346_v41  ;;  %v400_v10 = vadd.f32 %v399_v42, %v376_v50  ;;  %v417_v53 = vmul.f32 %v416_v55, %v688_v16  ;;  %v308_v54 = vrot.slane %v740_v63, %v606_v2 }
  0x4b   :  { %v332_v60 = vrot.slane %v743_v12, %v606_v2  ;;  %v441_v6 = vmul.f32 %v440_v3, %v691_v19  ;;  %v447_v8 = vmul.f32 %v446_v15, %v697_v30  ;;  %v285_v21 = vmul.f32 %v284_v23, %v684_v9 }
  0x4c   :  { %v394_v56 = vadd.f32 %v393_v49, %v370_v51  ;;  %v424_v14 = vadd.f32 %v423_v46, %v400_v10  ;;  %v309_v5 = vmul.f32 %v308_v54, %v693_v24  ;;  %v356_v16 = vrot.slane %v751_v29, %v606_v2 }
  0x4d   :  { %v333_v48 = vmul.f32 %v332_v60, %v699_v32  ;;  %v380_v63 = vrot.slane %v757_v44, %v606_v2  ;;  %v404_v30 = vrot.slane %v768_v22, %v606_v2  ;;  %v428_v32 = vrot.slane %v407_v4, %v606_v2 }
  0x4e   :  { %v418_v36 = vadd.f32 %v417_v53, %v394_v56  ;;  %v448_v12 = vadd.f32 %v447_v8, %v424_v14  ;;  %v310_v11 = vadd.f32 %v309_v5, %v285_v21  ;;  %v357_v19 = vmul.f32 %v356_v16, %v701_v33 }
  0x4f   :  { %v381_v24 = vmul.f32 %v380_v63, %v724_v52  ;;  %v405_v29 = vmul.f32 %v404_v30, %v728_v57  ;;  %v452_v34 = vrot.slane %v431_v25, %v606_v2  ;;  %v429_v1 = vmul.f32 %v428_v32, %v730_v58 }
  0x50   :  { %v442_v9 = vadd.f32 %v441_v6, %v418_v36  ;;  %v334_v61 = vadd.f32 %v333_v48, %v310_v11 }
  0x51   :  { %v453_v18 = vmul.f32 %v452_v34, %v732_v59 }
  0x52   :  { %v455_v20 = vsub.f32 %v442_v9, %v448_v12  ;;  %v358_v0 = vadd.f32 %v357_v19, %v334_v61 }
  0x54   :  { %457 = vst [vmem:[#allocation7 + $0x10] sm:$0xff] %v455_v20  ;;  %v382_v44 = vadd.f32 %v381_v24, %v358_v0 }
  0x56   :  { %v406_v33 = vadd.f32 %v405_v29, %v382_v44 }
  0x58   :  { %v430_v22 = vadd.f32 %v429_v1, %v406_v33 }
  0x5a   :  { %v454_v7 = vadd.f32 %v453_v18, %v430_v22 }
  0x5c   :  { %v458_v52 = vadd.f32 %v454_v7, %v442_v9 }
  0x5e   :  { %460 = vst [vmem:[#allocation7 + $0x18] sm:$0xff] %v458_v52 }
  0x5f   :  { %539 = shalt.err (!%p536_p6)
}
  0x60   :  { %s540_s10 = scalar_lea.hbm %s830_s2, 512 }
  0x61   :  { %p541_p7 = scmp.ne.s32.totalorder %s830_s2, %s540_s10  ;;  %p544_p8 = scmp.lt.u32.totalorder %s540_s10, %s830_s2 }
  0x63   :  { %p546_p9 = pnand %p544_p8, %p541_p7 }
  0x65   :  { %549 = shalt.err (!%p546_p9)
}
  0x66   :  { %472 = dma.vmem_to_hbm [thread:$0]  %s467_s6, 512, %s830_s2, [#allocation4], %s557_s19, %s557_s19, %s558_s20  }
  0x67   :  { %554 = dma.done.wait [#allocation4], 512  }
  0x68   :  { %555 = vsyncadd [#allocation4], 4294966784 }
  0x69   :  { %476 = vsyncpa [#allocation3], 1 }
  0x6a   :  { %477 = vsyncpa [#allocation6], 1 }
  0x6b   :  { %478 = vsyncpa [#allocation4], 1 }

</bundles_post_ra>
